<compile_context>
chip_gen: v6e
topology: v6e:2x2x1
jax: 0.10.0
libtpu: 0.0.40
codegen_flags: <defaults>
</compile_context>

<pallas_src>
import functools
import math

import jax
import jax.numpy as jnp
from jax import lax
from jax.experimental import pallas as pl
from jax.experimental.pallas import tpu as pltpu

LANE = 128
NEG_MASK = -1e30   # finite "minus infinity" baked into padded output-bias lanes


def _round_up(n, m=LANE):
    return ((n + m - 1) // m) * m


# ---------------------------------------------------------------------------
# Pass 1: hoisted input projection for all timesteps at once.
# ---------------------------------------------------------------------------
def _in_proj_kernel(x_ref, wx_ref, b_ref, gx_ref):
    x = x_ref[...]
    gx_ref[...] = (jnp.dot(x.astype(wx_ref.dtype), wx_ref[...],
                           preferred_element_type=jnp.float32)
                   + b_ref[...].astype(jnp.float32))


# ---------------------------------------------------------------------------
# Pass 2: serial GRU recurrence.  One grid step == Tc timesteps (unrolled).
# gx already contains bx (+ bh for the r/u gates); only bh_new stays inside
# because it is scaled by the reset gate.
# ---------------------------------------------------------------------------
def _gru_recurrent_kernel(gx_ref, hx_ref, wh_ref, bhn_ref, hy_ref, h_scr, *, tc):
    Hp = wh_ref.shape[0]

    @pl.when(pl.program_id(0) == 0)
    def _():
        h_scr[...] = hx_ref[...].astype(jnp.float32)

    h = h_scr[...]                                        # (B, Hp) f32 carry
    bhn = bhn_ref[...].astype(jnp.float32)                # (1, Hp)
    for i in range(tc):                                   # small Tc -> fully unrolled,
        gx = gx_ref[i]                                    # static indices (B, 3Hp) f32
        gh = jnp.dot(h.astype(wh_ref.dtype), wh_ref[...],
                     preferred_element_type=jnp.float32)  # (B, 3Hp)
        ru = jax.nn.sigmoid(gx[:, :2 * Hp] + gh[:, :2 * Hp])
        r = ru[:, :Hp]
        u = ru[:, Hp:]
        n = jnp.tanh(gx[:, 2 * Hp:] + r * (gh[:, 2 * Hp:] + bhn))
        h = n + u * (h - n)                               # == u*h + (1-u)*n
        hy_ref[i] = h
    h_scr[...] = h


# ---------------------------------------------------------------------------
# Pass 3: hoisted output projection + log-softmax for all timesteps at once.
# Padded output lanes are masked by the -1e30 baked into bo's padded lanes.
# ---------------------------------------------------------------------------
def _out_proj_kernel(hy_ref, wo_ref, bo_ref, out_ref):
    hy = hy_ref[...]
    logits = (jnp.dot(hy.astype(wo_ref.dtype), wo_ref[...],
                      preferred_element_type=jnp.float32)
              + bo_ref[...].astype(jnp.float32))
    m = jnp.max(logits, axis=-1, keepdims=True)
    shifted = logits - m
    denom = jnp.sum(jnp.exp(shifted), axis=-1, keepdims=True)
    out_ref[...] = (shifted - jnp.log(denom)).astype(out_ref.dtype)


# ---------------------------------------------------------------------------
# Parameters
# ---------------------------------------------------------------------------
def init_params(key, input_size, hidden_size, output_size, dtype=jnp.float32):
    """Matches MyGRU.reset_parameters: every param ~ U(-1/sqrt(H), 1/sqrt(H)).
    Weights stored as (in_features, out_features) so kernels compute y = x @ W + b."""
    std = 1.0 / math.sqrt(hidden_size)
    ks = jax.random.split(key, 6)
    u = lambda k, shape: jax.random.uniform(k, shape, dtype, minval=-std, maxval=std)
    return {
        "wx": u(ks[0], (input_size, 3 * hidden_size)),
        "bx": u(ks[1], (1, 3 * hidden_size)),
        "wh": u(ks[2], (hidden_size, 3 * hidden_size)),
        "bh": u(ks[3], (1, 3 * hidden_size)),
        "wo": u(ks[4], (hidden_size, output_size)),
        "bo": u(ks[5], (1, output_size)),
    }


def prepare_params(params, hidden_size, output_size, matmul_dtype=jnp.float32):
    """Pad gate/output columns to 128 lanes; fold biases; bake the output-lane mask.

    matmul_dtype=jnp.bfloat16 is recommended on v6e/v7x (256-wide MXU); f32 default
    keeps the tight reference tolerance.  Gate elementwise math is always f32.
    """
    H, O = hidden_size, output_size
    Hp, Op = _round_up(H), _round_up(O)

    def pad_gate_cols(w):  # (rows, 3H) -> (rows, 3Hp), each gate padded independently
        parts = [jnp.pad(w[:, g * H:(g + 1) * H], ((0, 0), (0, Hp - H))) for g in range(3)]
        return jnp.concatenate(parts, axis=1)

    def gate_bias(b, g):   # (1, 3H) -> (1, Hp)
        return jnp.pad(b[:, g * H:(g + 1) * H], ((0, 0), (0, Hp - H)))

    wx_p = pad_gate_cols(params["wx"]).astype(matmul_dtype)                   # (I, 3Hp)
    wh_p = jnp.pad(pad_gate_cols(params["wh"]),
                   ((0, Hp - H), (0, 0))).astype(matmul_dtype)                # (Hp, 3Hp)

    bx, bh = params["bx"], params["bh"]
    # Biases folded into the parallel input-projection pass:
    #   r/u gates: bx + bh (both add before the sigmoid);
    #   new gate : bx only (bh_new is scaled by r -> must stay inside the recurrence).
    b_fold = jnp.concatenate([gate_bias(bx, 0) + gate_bias(bh, 0),
                              gate_bias(bx, 1) + gate_bias(bh, 1),
                              gate_bias(bx, 2)], axis=1).astype(jnp.float32)  # (1, 3Hp)
    bhn = gate_bias(bh, 2).astype(jnp.float32)                                # (1, Hp)

    wo_p = jnp.pad(params["wo"], ((0, Hp - H), (0, Op - O))).astype(matmul_dtype)
    # Padded output lanes carry a large negative bias -> masked out of the log-softmax
    # without any per-element iota/compare/select in the kernel.
    bo_p = jnp.pad(params["bo"].astype(jnp.float32), ((0, 0), (0, Op - O)),
                   constant_values=NEG_MASK)                                  # (1, Op)

    # Correctness invariant: padded gate COLUMNS of wx_p/wh_p, padded lanes of
    # b_fold/bhn and padded ROWS of wh_p/wo_p are exactly zero, so padded hidden
    # lanes never leak into valid outputs.  Only bo_p carries the -1e30 mask.
    return {"wx": wx_p, "wh": wh_p, "b_fold": b_fold, "bhn": bhn,
            "wo": wo_p, "bo": bo_p, "H": H, "Hp": Hp, "O": O, "Op": Op}


# ---------------------------------------------------------------------------
# Wrappers
# ---------------------------------------------------------------------------
def my_gru_sequence(x_seq, hx, kparams, tc=8):
    """Run the GRU cell over a (T, B, I) sequence.
    Returns (log_softmax outputs (T, B, O), final hidden state (B, H))."""
    T, B, I = x_seq.shape
    H, Hp, O, Op = kparams["H"], kparams["Hp"], kparams["O"], kparams["Op"]

    # ---- Pass 1: hoisted input projection (one big MXU-friendly matmul). ----
    x_flat = x_seq.reshape(T * B, I)
    gx_flat = pl.pallas_call(
        _in_proj_kernel,
        out_shape=jax.ShapeDtypeStruct((T * B, 3 * Hp), jnp.float32),
    )(x_flat, kparams["wx"], kparams["b_fold"])

    # ---- Pass 2: serial recurrence, Tc timesteps per grid step. ----
    Tc = max(1, min(tc, T))
    T_pad = pl.cdiv(T, Tc) * Tc
    gx_all = gx_flat.reshape(T, B, 3 * Hp)
    if T_pad != T:
        gx_all = jnp.pad(gx_all, ((0, T_pad - T), (0, 0), (0, 0)))

    if hx is None:
        hx_p = jnp.zeros((B, Hp), jnp.float32)
    else:
        hx_p = jnp.pad(hx.astype(jnp.float32), ((0, 0), (0, Hp - H)))

    hy_all = pl.pallas_call(
        functools.partial(_gru_recurrent_kernel, tc=Tc),
        out_shape=jax.ShapeDtypeStruct((T_pad, B, Hp), jnp.float32),
        grid_spec=pltpu.PrefetchScalarGridSpec(
            num_scalar_prefetch=0,
            grid=(T_pad // Tc,),
            in_specs=[
                pl.BlockSpec((Tc, B, 3 * Hp), lambda s: (s, 0, 0)),  # gx streamed
                pl.BlockSpec((B, Hp), lambda s: (0, 0)),             # hx (resident)
                pl.BlockSpec((Hp, 3 * Hp), lambda s: (0, 0)),        # wh (resident)
                pl.BlockSpec((1, Hp), lambda s: (0, 0)),             # bh_new (resident)
            ],
            out_specs=pl.BlockSpec((Tc, B, Hp), lambda s: (s, 0, 0)),
            scratch_shapes=[pltpu.VMEM((B, Hp), jnp.float32)],       # hidden carry
        ),
        compiler_params=pltpu.CompilerParams(
            dimension_semantics=("arbitrary",)),                     # serial carry
    )(gx_all, hx_p, kparams["wh"], kparams["bhn"])

    # ---- Pass 3: hoisted output projection + masked log-softmax. ----
    hy_flat = hy_all[:T].reshape(T * B, Hp)
    out_flat = pl.pallas_call(
        _out_proj_kernel,
        out_shape=jax.ShapeDtypeStruct((T * B, Op), x_seq.dtype),
    )(hy_flat, kparams["wo"], kparams["bo"])

    out = out_flat.reshape(T, B, Op)[:, :, :O]
    hy_final = hy_all[T - 1, :, :H].astype(x_seq.dtype)
    return out, hy_final


def my_gru_forward(x, hx, kparams):
    """Single-step forward matching MyGRU.forward for a batched 2-D input."""
    # TODO(synk): the PyTorch module also supports a 1-D (unbatched) input path with
    # LogSoftmax over dim=0; only the batched 2-D path is implemented here.
    out_seq, hy = my_gru_sequence(x[None], hx, kparams, tc=1)
    return out_seq[0], hy


# ---------------------------------------------------------------------------
# Plain-JAX reference mirroring the PyTorch forward (batched path).
# ---------------------------------------------------------------------------
def _reference_step(x, hx, params):
    if hx is None:
        hx = jnp.zeros((x.shape[0], params["wh"].shape[0]), x.dtype)
    x_t = x @ params["wx"] + params["bx"]
    h_t = hx @ params["wh"] + params["bh"]
    H = params["wh"].shape[0]
    xr, xu, xn = x_t[:, :H], x_t[:, H:2 * H], x_t[:, 2 * H:]
    hr, hu, hn = h_t[:, :H], h_t[:, H:2 * H], h_t[:, 2 * H:]
    r = jax.nn.sigmoid(xr + hr)
    u = jax.nn.sigmoid(xu + hu)
    n = jnp.tanh(xn + r * hn)
    hy = u * hx + (1 - u) * n
    out = hy @ params["wo"] + params["bo"]
    return jax.nn.log_softmax(out, axis=1), hy


if __name__ == "__main__":
    input_size, hidden_size, output_size = 16, 32, 10
    batch, seq_len = 8, 6

    key = jax.random.PRNGKey(0)
    k_param, k_x, k_h = jax.random.split(key, 3)

    params = init_params(k_param, input_size, hidden_size, output_size)
    kparams = prepare_params(params, hidden_size, output_size)

    x_seq = jax.random.normal(k_x, (seq_len, batch, input_size), dtype=jnp.float32)
    hx = jax.random.normal(k_h, (batch, hidden_size), dtype=jnp.float32)

    # Multi-step path (3 pallas_calls total: in-proj, recurrence, out-proj+logsoftmax).
    out_seq, hy_seq = jax.block_until_ready(my_gru_sequence(x_seq, hx, kparams))

    # Reference: apply the cell step-by-step in plain JAX.
    ref_h = hx
    ref_outs = []
    for t in range(seq_len):
        o, ref_h = _reference_step(x_seq[t], ref_h, params)
        ref_outs.append(o)
    ref_outs = jnp.stack(ref_outs)

    assert out_seq.shape == (seq_len, batch, output_size)
    assert hy_seq.shape == (batch, hidden_size)
    assert jnp.allclose(out_seq, ref_outs, atol=1e-5, rtol=1e-5)
    assert jnp.allclose(hy_seq, ref_h, atol=1e-5, rtol=1e-5)

    # Single-step path (the module's forward), with and without hx.
    out1, hy1 = jax.block_until_ready(my_gru_forward(x_seq[0], hx, kparams))
    r_out1, r_hy1 = _reference_step(x_seq[0], hx, params)
    assert jnp.allclose(out1, r_out1, atol=1e-5, rtol=1e-5)
    assert jnp.allclose(hy1, r_hy1, atol=1e-5, rtol=1e-5)

    out0, hy0 = jax.block_until_ready(my_gru_forward(x_seq[0], None, kparams))
    r_out0, r_hy0 = _reference_step(x_seq[0], None, params)
    assert jnp.allclose(out0, r_out0, atol=1e-5, rtol=1e-5)
    assert jnp.allclose(hy0, r_hy0, atol=1e-5, rtol=1e-5)

    print("KERNEL_OK")
</pallas_src>

<mosaic_0001>
module attributes {stable_mosaic.version = 11 : i64} {
  func.func @_in_proj_kernel(%arg0: memref<48x16xf32, #tpu.memory_space<vmem>>, %arg1: memref<16x384xf32, #tpu.memory_space<vmem>>, %arg2: memref<1x384xf32, #tpu.memory_space<vmem>>, %arg3: memref<48x384xf32, #tpu.memory_space<vmem>>) attributes {dimension_semantics = [], scalar_prefetch = 0 : i64, scratch_operands = 0 : i64, tpu.core_type = #tpu.core_type<tc>} {
    %c0 = arith.constant 0 : index
    %c0_0 = arith.constant 0 : index
    %0 = vector.load %arg0[%c0, %c0_0] : memref<48x16xf32, #tpu.memory_space<vmem>>, vector<48x16xf32>
    %c0_1 = arith.constant 0 : index
    %c0_2 = arith.constant 0 : index
    %1 = vector.load %arg1[%c0_1, %c0_2] : memref<16x384xf32, #tpu.memory_space<vmem>>, vector<16x384xf32>
    %cst = arith.constant dense<0.000000e+00> : vector<48x384xf32>
    %2 = tpu.matmul %0, %1, %cst {dimension_numbers = #tpu.dot_dimension_numbers<[1], [0], [0], [1], [0, 0, 1, 1], [], []>} : vector<48x16xf32>, vector<16x384xf32>, vector<48x384xf32> -> vector<48x384xf32>
    %c0_3 = arith.constant 0 : index
    %c0_4 = arith.constant 0 : index
    %3 = vector.load %arg2[%c0_3, %c0_4] : memref<1x384xf32, #tpu.memory_space<vmem>>, vector<1x384xf32>
    %4 = vector.broadcast %3 : vector<1x384xf32> to vector<48x384xf32>
    %5 = arith.addf %2, %4 : vector<48x384xf32>
    %c0_5 = arith.constant 0 : index
    %c0_6 = arith.constant 0 : index
    %6 = vector.load %arg3[%c0_5, %c0_6] : memref<48x384xf32, #tpu.memory_space<vmem>>, vector<48x384xf32>
    tpu.vector_store %arg3[%c0_5, %c0_6], %5 {strides = array<i32>} : memref<48x384xf32, #tpu.memory_space<vmem>>, vector<48x384xf32>,
    return
  }
}

</mosaic_0001>

<bundles_post_ra>
// kernel: tpu_custom_call.1
= control target key start
LH: loop header
LB: loop body
LE: loop exit
PB: predicated region body
PF: predicated region fallthrough
CT: control target
= control target key end

     0   :  { %vm44_vm0 = vcmask 130048   ;;  %v356_v5 = vmov 0.0   ;;  %s434_s0 = inlined_call_operand.vmem [shape: f32[48,16], index: 0, kind: input, shape index: {}]   ;;  %s435_s1 = inlined_call_operand.vmem [shape: f32[16,384], index: 1, kind: input, shape index: {}]   ;;  %s436_s2 = inlined_call_operand.vmem [shape: f32[1,384], index: 2, kind: input, shape index: {}]   ;;  %s437_s3 = inlined_call_operand.hbm [shape: f32[48,384], index: 3, kind: output, shape index: {}]  }
   0x1   :  { %v25_v0 = vld [vmem:[%s435_s1 + $0x20] sm:$0xff]  ;;  %v24_v1 = vld [vmem:[%s435_s1 + $0x18] sm:$0xff]  ;;  %v22_v2 = vld [vmem:[%s435_s1 + $0x8] sm:$0xff]  ;;  %127 = vmatprep.mubr.f32.mxu0 %v356_v5 }
   0x2   :  { %91 = vmatprep.subr.mxu0 %v25_v0  ;;  %326 = vmatprep.subr.mxu1 %v25_v0  ;;  %v21_v3 = vld [vmem:[%s435_s1] sm:$0xff]  ;;  %v26_v6 = vld [vmem:[%s435_s1 + $0x28] sm:$0xff] }
   0x3   :  { %92 = vmatpush1.msra.mxu0 %v24_v1  ;;  %328 = vmatpush1.msra.mxu1 %v24_v1  ;;  %v15_v4 = vld [vmem:[%s434_s0] sm:$0xff]  ;;  %v20_v7 = vld [vmem:[%s434_s0 + $0x28] sm:$0xff] }
   0x4   :  { %93 = vmatprep.subr.mxu0 %v22_v2  ;;  %327 = vmatprep.subr.mxu1 %v22_v2 }
   0x5   :  { %94 = vmatpush1.msra.mxu0 %v21_v3 }
   0x6   :  { %8 = vsyncpa [#allocation3], 0  ;;  %293 = vmatmul.mubr.msk.f32.vlgmr.msra.gmra.mxu0 %vm44_vm0, %v15_v4  ;;  %329 = vmatpush1.msra.mxu1 %v21_v3  ;;  %v16_v8 = vld [vmem:[%s434_s0 + $0x8] sm:$0xff]  ;;  %v23_v9 = vld [vmem:[%s435_s1 + $0x10] sm:$0xff]  ;;  %v29_v13 = vlaneseq }
   0x7   :  { %157 = vmatprep.mubr.f32.mxu1 %v356_v5  ;;  %313 = vmatprep.subr.mxu1 %v26_v6  ;;  %v17_v10 = vld [vmem:[%s434_s0 + $0x10] sm:$0xff]  ;;  %v18_v11 = vld [vmem:[%s434_s0 + $0x18] sm:$0xff]  ;;  %v19_v12 = vld [vmem:[%s434_s0 + $0x20] sm:$0xff]  ;;  %s357_s0 = smov [#allocation2]  }
   0x8   :  { %298 = vmatmul.mubr.msk.f32.vlgmr.msra.gmra.mxu1 %vm44_vm0, %v20_v7  ;;  %133 = vmatprep.mubr.f32.mxu0 %v356_v5  ;;  %v30_v14 = vshrl.u32 %v29_v13, 7  ;;  %v27_v16 = vld [vmem:[%s436_s2] sm:$0x7]  ;;  %s282_s2 = sshll.u32 %s357_s0, 4  ;;  %s283_s2 = int_to_ptr.vmem [resolvable:$true] %s282_s2 }
   0x9   :  { %314 = vmatpush3.msra.mxu1 %v26_v6  ;;  %317 = vmatprep.mubr.msk.f32.mxu1 %vm44_vm0, %v15_v4  ;;  %s334_s10 = scalar_lea.vmem %s283_s2, 2304  ;;  %p339_p1 = scmp.lt.s32.totalorder %s283_s2, %s283_s2 }
   0xa   :  { %294 = vmatmul.mubr.msk.f32.gmra.mxu0 %vm44_vm0, %v16_v8  ;;  %315 = vmatprep.subr.mxu1 %v23_v9  ;;  %v31_v15 = vsub.s32 0, %v30_v14  ;;  %v35_v17 = vsub.s32 1, %v30_v14  ;;  %v39_v20 = vsub.s32 2, %v30_v14  ;;  %p335_p0 = scmp.ne.s32.totalorder %s283_s2, %s334_s10  ;;  %p340_p2 = scmp.lt.s32.totalorder %s334_s10, %s334_s10 }
   0xb   :  { %316 = vmatpush3.msra.mxu1 %v23_v9  ;;  %139 = vmatprep.mubr.f32.mxu0 %v356_v5 }
   0xc   :  { %318 = vmatmul.mubr.msk.f32.vlgmr.msra.gmra.mxu1 %vm44_vm0, %v16_v8  ;;  %v32_v18 = vrot.slane %v27_v16, %v31_v15  ;;  %v36_v19 = vrot.slane %v27_v16, %v35_v17  ;;  %v40_v27 = vrot.slane %v27_v16, %v39_v20  ;;  %p341_p3 = por %p340_p2, %p339_p1 }
   0xd   :  { %320 = vmatprep.mubr.msk.f32.mxu1 %vm44_vm0, %v17_v10 }
   0xe   :  { %295 = vmatmul.mubr.msk.f32.gmra.mxu0 %vm44_vm0, %v17_v10  ;;  %p342_p4 = pnand %p341_p3, %p335_p0 }
   0xf   :  { %145 = vmatprep.mubr.f32.mxu0 %v356_v5 }
  0x10   :  { %321 = vmatmul.mubr.msk.f32.gmra.mxu1 %vm44_vm0, %v18_v11 }
  0x11   :  { %323 = vmatprep.mubr.msk.f32.mxu1 %vm44_vm0, %v19_v12 }
  0x12   :  { %296 = vmatmul.mubr.msk.f32.gmra.mxu0 %vm44_vm0, %v18_v11 }
  0x13   :  { %151 = vmatprep.mubr.f32.mxu0 %v356_v5 }
  0x14   :  { %324 = vmatmul.mubr.msk.f32.gmra.mxu1 %vm44_vm0, %v20_v7 }
  0x16   :  { %297 = vmatmul.mubr.msk.f32.gmra.mxu0 %vm44_vm0, %v19_v12 }
  0xc6   :  { %v129_v21 = vpop.f32.mrf.mxu0 }
  0xc7   :  { %v130_v22 = vadd.f32 %v129_v21, %v32_v18 }
  0xc8   :  { %v131_v23 = vpop.f32.mrf.mxu0  ;;  %v159_v24 = vpop.f32.mrf.mxu1 }
  0xc9   :  { %259 = vst [vmem:[#allocation2] sm:$0xff] %v130_v22  ;;  %v132_v25 = vadd.f32 %v131_v23, %v36_v19  ;;  %v160_v26 = vadd.f32 %v159_v24, %v32_v18 }
  0xca   :  { %v135_v28 = vpop.f32.mrf.mxu0  ;;  %v161_v29 = vpop.f32.mrf.mxu1 }
  0xcb   :  { %260 = vst [vmem:[#allocation2 + $0x8] sm:$0xff] %v132_v25  ;;  %274 = vst [vmem:[#allocation2 + $0x78] sm:$0xff] %v160_v26  ;;  %v136_v30 = vadd.f32 %v135_v28, %v32_v18  ;;  %v162_v31 = vadd.f32 %v161_v29, %v36_v19 }
  0xcc   :  { %v137_v32 = vpop.f32.mrf.mxu0  ;;  %v319_v33 = vpop.f32.mrf.mxu1 }
  0xcd   :  { %262 = vst [vmem:[#allocation2 + $0x18] sm:$0xff] %v136_v30  ;;  %275 = vst [vmem:[#allocation2 + $0x80] sm:$0xff] %v162_v31  ;;  %v138_v34 = vadd.f32 %v137_v32, %v36_v19  ;;  %v236_v35 = vadd.f32 %v319_v33, %v40_v27 }
  0xce   :  { %v141_v36 = vpop.f32.mrf.mxu0  ;;  %v230_v37 = vpop.f32.mrf.mxu1 }
  0xcf   :  { %263 = vst [vmem:[#allocation2 + $0x20] sm:$0xff] %v138_v34  ;;  %264 = vst [vmem:[#allocation2 + $0x28] sm:$0xff] %v236_v35  ;;  %v142_v38 = vadd.f32 %v141_v36, %v32_v18  ;;  %v231_v39 = vadd.f32 %v230_v37, %v40_v27 }
  0xd0   :  { %v143_v40 = vpop.f32.mrf.mxu0  ;;  %v322_v41 = vpop.f32.mrf.mxu1 }
  0xd1   :  { %265 = vst [vmem:[#allocation2 + $0x30] sm:$0xff] %v142_v38  ;;  %261 = vst [vmem:[#allocation2 + $0x10] sm:$0xff] %v231_v39  ;;  %v144_v42 = vadd.f32 %v143_v40, %v36_v19  ;;  %v246_v43 = vadd.f32 %v322_v41, %v40_v27 }
  0xd2   :  { %v147_v44 = vpop.f32.mrf.mxu0  ;;  %v240_v45 = vpop.f32.mrf.mxu1 }
  0xd3   :  { %266 = vst [vmem:[#allocation2 + $0x38] sm:$0xff] %v144_v42  ;;  %270 = vst [vmem:[#allocation2 + $0x58] sm:$0xff] %v246_v43  ;;  %v148_v46 = vadd.f32 %v147_v44, %v32_v18  ;;  %v241_v47 = vadd.f32 %v240_v45, %v40_v27 }
  0xd4   :  { %v149_v48 = vpop.f32.mrf.mxu0  ;;  %v325_v49 = vpop.f32.mrf.mxu1 }
  0xd5   :  { %268 = vst [vmem:[#allocation2 + $0x48] sm:$0xff] %v148_v46  ;;  %267 = vst [vmem:[#allocation2 + $0x40] sm:$0xff] %v241_v47  ;;  %v150_v50 = vadd.f32 %v149_v48, %v36_v19  ;;  %v256_v51 = vadd.f32 %v325_v49, %v40_v27 }
  0xd6   :  { %v153_v52 = vpop.f32.mrf.mxu0  ;;  %v250_v53 = vpop.f32.mrf.mxu1 }
  0xd7   :  { %269 = vst [vmem:[#allocation2 + $0x50] sm:$0xff] %v150_v50  ;;  %276 = vst [vmem:[#allocation2 + $0x88] sm:$0xff] %v256_v51  ;;  %v154_v54 = vadd.f32 %v153_v52, %v32_v18  ;;  %v251_v55 = vadd.f32 %v250_v53, %v40_v27 }
  0xd8   :  { %v155_v56 = vpop.f32.mrf.mxu0 }
  0xd9   :  { %271 = vst [vmem:[#allocation2 + $0x60] sm:$0xff] %v154_v54  ;;  %273 = vst [vmem:[#allocation2 + $0x70] sm:$0xff] %v251_v55  ;;  %v156_v57 = vadd.f32 %v155_v56, %v36_v19 }
  0xdb   :  { %272 = vst [vmem:[#allocation2 + $0x68] sm:$0xff] %v156_v57 }
  0xdc   :  { %345 = shalt.err (!%p342_p4)
}
  0xdd   :  { %s358_s11 = smov 384   ;;  %s359_s12 = smov 24  }
  0xde   :  { %288 = dma.vmem_to_hbm [thread:$0]  %s283_s2, 2304, %s437_s3, [#allocation3], %s358_s11, %s358_s11, %s359_s12  }
  0xdf   :  { %354 = dma.done.wait [#allocation3], 2304  }
  0xe0   :  { %355 = vsyncadd [#allocation3], 4294964992 }
  0xe1   :  { %292 = vsyncpa [#allocation3], 1 }

</bundles_post_ra>
